<compile_context>
chip_gen: v7x
topology: tpu7x:2x2x1
jax: 0.10.0
libtpu: 0.0.40
codegen_flags: <defaults>
</compile_context>

<pallas_src>
import functools

import jax
import jax.numpy as jnp
from jax.experimental import pallas as pl
from jax.experimental.pallas import tpu as pltpu


# ---------------------------------------------------------------------------
# Kernel 1: hoisted input projection   gates_x = x @ W_ih^T + (b_ih + b_hh)
# ---------------------------------------------------------------------------
def _input_proj_kernel(x_ref, w_ref, b_ref, out_ref):
    out_ref[...] = (
        jnp.dot(x_ref[...], w_ref[...], preferred_element_type=jnp.float32)
        + b_ref[...]
    )


def input_projection(x_flat_bf16, w_ih_t_bf16, bias_f32):
    """x_flat_bf16: (M, E) bf16; w_ih_t_bf16: (E, 4H) bf16; bias_f32: (1, 4H) f32.
    Returns gates_x: (M, 4H) f32."""
    M, E = x_flat_bf16.shape
    H4 = w_ih_t_bf16.shape[1]

    # Largest row tile (<= 512) that divides M; otherwise the whole slab.
    bm = M
    for cand in (512, 256, 128):
        if M % cand == 0:
            bm = cand
            break

    return pl.pallas_call(
        _input_proj_kernel,
        out_shape=jax.ShapeDtypeStruct((M, H4), jnp.float32),
        grid=(M // bm,),
        in_specs=[
            pl.BlockSpec((bm, E), lambda i: (i, 0)),     # activations row tile
            pl.BlockSpec((E, H4), lambda i: (0, 0)),     # W_ih^T (resident)
            pl.BlockSpec((1, H4), lambda i: (0, 0)),     # combined bias
        ],
        out_specs=pl.BlockSpec((bm, H4), lambda i: (i, 0)),
        compiler_params=pltpu.CompilerParams(
            dimension_semantics=("parallel",)),
    )(x_flat_bf16, w_ih_t_bf16, bias_f32)


# ---------------------------------------------------------------------------
# Kernel 2: fused time recurrence — single invocation, in-kernel time loop
# ---------------------------------------------------------------------------
def _lstm_recurrence_kernel(gx_ref, whh_ref, h_out_ref, c_out_ref,
                            *, hidden_dim, seq_len, unroll):
    H = hidden_dim
    B = h_out_ref.shape[0]

    whh = whh_ref[...]                                   # (H, 4H) bf16, hoisted
    # Lane mask selecting the 'g' (cell candidate) columns [2H, 3H); hoisted.
    col = jax.lax.broadcasted_iota(jnp.int32, (B, 4 * H), 1)
    is_g = jnp.logical_and(col >= 2 * H, col < 3 * H)

    def step(t, carry):
        h_prev, c_prev = carry                           # (B, H) f32 each
        # Recurrent matmul only: input projection + bias were precomputed.
        gates = gx_ref[t] + jnp.dot(
            h_prev.astype(whh.dtype), whh,
            preferred_element_type=jnp.float32)          # (B, 4H) f32
        # Lane-dense activations over the full vreg (EUP), per-gate select via mask.
        act = jnp.where(is_g, jnp.tanh(gates), jax.nn.sigmoid(gates))
        i_g = act[:, 0 * H:1 * H]
        f_g = act[:, 1 * H:2 * H]
        g_g = act[:, 2 * H:3 * H]
        o_g = act[:, 3 * H:4 * H]
        c_new = f_g * c_prev + i_g * g_g
        h_new = o_g * jnp.tanh(c_new)
        return h_new, c_new

    h0 = jnp.zeros((B, H), jnp.float32)
    c0 = jnp.zeros((B, H), jnp.float32)
    h_T, c_T = jax.lax.fori_loop(0, seq_len, step, (h0, c0), unroll=unroll)
    h_out_ref[...] = h_T
    c_out_ref[...] = c_T


def lstm_last_state(gates_x_tm, w_hh_t_bf16):
    """gates_x_tm: (S, B, 4H) f32 time-major precomputed gate pre-activations.
    w_hh_t_bf16: (H, 4H) bf16.  Returns (h_T, c_T), each (B, H) f32."""
    S, B, H4 = gates_x_tm.shape
    H = H4 // 4
    assert S >= 1, "empty sequence: nn.LSTM requires S >= 1"

    kernel = functools.partial(
        _lstm_recurrence_kernel, hidden_dim=H, seq_len=S, unroll=(S <= 32))

    h_last, c_last = pl.pallas_call(
        kernel,
        out_shape=(jax.ShapeDtypeStruct((B, H), jnp.float32),
                   jax.ShapeDtypeStruct((B, H), jnp.float32)),
        grid=(1,),
        in_specs=[
            pl.BlockSpec((S, B, H4), lambda i: (0, 0, 0)),  # whole sequence in VMEM
            pl.BlockSpec((H, H4), lambda i: (0, 0)),        # W_hh^T (resident)
        ],
        out_specs=(pl.BlockSpec((B, H), lambda i: (0, 0)),
                   pl.BlockSpec((B, H), lambda i: (0, 0))),
        compiler_params=pltpu.CompilerParams(
            dimension_semantics=("arbitrary",)),            # recurrence is serial
    )(gates_x_tm, w_hh_t_bf16)
    return h_last, c_last


# ---------------------------------------------------------------------------
# Forward pass matching PyTorch Encoder.forward(src) -> (hidden, cell)
# ---------------------------------------------------------------------------
def encoder_forward(src, params):
    """src: (B, S) int32 token ids.  Returns (hidden, cell), each (1, B, H)."""
    emb_table = params["embedding"]                       # (V, E) f32
    B, S = src.shape
    E = emb_table.shape[1]

    # Embedding lookup (data-dependent gather) — plain JAX glue.
    embedded = jnp.take(emb_table, src, axis=0)           # (B, S, E) f32
    x_flat = embedded.reshape(B * S, E).astype(jnp.bfloat16)

    # Hoisted input projection (one big lane-dense matmul, incl. bias).
    gates_x = input_projection(x_flat, params["w_ih_t"], params["bias"])  # (B*S, 4H)

    # Reorder only the small gate pre-activations to time-major.
    H4 = gates_x.shape[1]
    gates_x_tm = jnp.transpose(gates_x.reshape(B, S, H4), (1, 0, 2))      # (S, B, 4H)

    h_last, c_last = lstm_last_state(gates_x_tm, params["w_hh_t"])
    return h_last[None, :, :], c_last[None, :, :]          # (1, B, H) each


def init_params(key, input_dim, emb_dim, hidden_dim):
    k0, k1, k2, k3, k4 = jax.random.split(key, 5)
    bound = 1.0 / jnp.sqrt(hidden_dim)
    emb = jax.random.normal(k0, (input_dim, emb_dim), jnp.float32)
    # PyTorch stores W_ih (4H, E), W_hh (4H, H); keep transposed bf16 copies.
    w_ih = jax.random.uniform(k1, (4 * hidden_dim, emb_dim), jnp.float32,
                              -bound, bound)
    w_hh = jax.random.uniform(k2, (4 * hidden_dim, hidden_dim), jnp.float32,
                              -bound, bound)
    b_ih = jax.random.uniform(k3, (4 * hidden_dim,), jnp.float32, -bound, bound)
    b_hh = jax.random.uniform(k4, (4 * hidden_dim,), jnp.float32, -bound, bound)
    return {
        "embedding": emb,
        "w_ih_t": jnp.transpose(w_ih).astype(jnp.bfloat16),   # (E, 4H) bf16
        "w_hh_t": jnp.transpose(w_hh).astype(jnp.bfloat16),   # (H, 4H) bf16
        "bias": (b_ih + b_hh)[None, :],                       # (1, 4H) f32
    }


# Pure-JAX f32 reference (PyTorch nn.LSTM semantics) for a sanity check.
def _reference_encoder(src, params):
    emb = params["embedding"]
    x = jnp.take(emb, src, axis=0)                        # (B, S, E)
    w_ih_t = params["w_ih_t"].astype(jnp.float32)
    w_hh_t = params["w_hh_t"].astype(jnp.float32)
    bias = params["bias"]
    B, S, _ = x.shape
    H = w_hh_t.shape[0]

    def step(carry, x_t):
        h, c = carry
        gates = x_t @ w_ih_t + h @ w_hh_t + bias
        i = jax.nn.sigmoid(gates[:, 0 * H:1 * H])
        f = jax.nn.sigmoid(gates[:, 1 * H:2 * H])
        g = jnp.tanh(gates[:, 2 * H:3 * H])
        o = jax.nn.sigmoid(gates[:, 3 * H:4 * H])
        c = f * c + i * g
        h = o * jnp.tanh(c)
        return (h, c), None

    init = (jnp.zeros((B, H), jnp.float32), jnp.zeros((B, H), jnp.float32))
    (h, c), _ = jax.lax.scan(step, init, jnp.transpose(x, (1, 0, 2)))
    return h[None], c[None]


if __name__ == "__main__":
    INPUT_DIM = 10      # vocab size
    EMB_DIM = 16
    HIDDEN_DIM = 32
    BATCH = 2
    SEQ = 8

    key = jax.random.PRNGKey(0)
    k_param, k_src = jax.random.split(key)
    params = init_params(k_param, INPUT_DIM, EMB_DIM, HIDDEN_DIM)
    src = jax.random.randint(k_src, (BATCH, SEQ), 0, INPUT_DIM, dtype=jnp.int32)

    hidden, cell = jax.jit(encoder_forward)(src, params)
    jax.block_until_ready((hidden, cell))

    assert hidden.shape == (1, BATCH, HIDDEN_DIM)
    assert cell.shape == (1, BATCH, HIDDEN_DIM)

    # Numerical sanity check vs. f32 reference (bf16 matmuls -> loose tolerance).
    h_ref, c_ref = _reference_encoder(src, params)
    assert jnp.max(jnp.abs(hidden - h_ref)) < 5e-2
    assert jnp.max(jnp.abs(cell - c_ref)) < 5e-2

    print("KERNEL_OK")
</pallas_src>

<mosaic_0001>
module attributes {stable_mosaic.version = 11 : i64} {
  func.func @_input_proj_kernel(%arg0: i32, %arg1: memref<16x16xbf16, #tpu.memory_space<vmem>>, %arg2: memref<16x128xbf16, #tpu.memory_space<vmem>>, %arg3: memref<1x128xf32, #tpu.memory_space<vmem>>, %arg4: memref<16x128xf32, #tpu.memory_space<vmem>>) attributes {dimension_semantics = [#tpu.dimension_semantics<parallel>], iteration_bounds = array<i64: 1>, scalar_prefetch = 0 : i64, scratch_operands = 0 : i64, tpu.core_type = #tpu.core_type<tc>, window_params = [{transform_indices = @transform_0, window_bounds = array<i64: 16, 16>}, {pipeline_mode = #tpu.pipeline_mode<synchronous>, transform_indices = @transform_1, window_bounds = array<i64: 16, 128>}, {pipeline_mode = #tpu.pipeline_mode<synchronous>, transform_indices = @transform_2, window_bounds = array<i64: 1, 128>}, {transform_indices = @transform_3, window_bounds = array<i64: 16, 128>}]} {
    %c0 = arith.constant 0 : index
    %c0_0 = arith.constant 0 : index
    %0 = vector.load %arg1[%c0, %c0_0] : memref<16x16xbf16, #tpu.memory_space<vmem>>, vector<16x16xbf16>
    %c0_1 = arith.constant 0 : index
    %c0_2 = arith.constant 0 : index
    %1 = vector.load %arg2[%c0_1, %c0_2] : memref<16x128xbf16, #tpu.memory_space<vmem>>, vector<16x128xbf16>
    %cst = arith.constant dense<0.000000e+00> : vector<16x128xf32>
    %2 = tpu.matmul %0, %1, %cst {dimension_numbers = #tpu.dot_dimension_numbers<[1], [0], [0], [1], [0, 0, 1, 1], [], []>} : vector<16x16xbf16>, vector<16x128xbf16>, vector<16x128xf32> -> vector<16x128xf32>
    %c0_3 = arith.constant 0 : index
    %c0_4 = arith.constant 0 : index
    %3 = vector.load %arg3[%c0_3, %c0_4] : memref<1x128xf32, #tpu.memory_space<vmem>>, vector<1x128xf32>
    %4 = vector.broadcast %3 : vector<1x128xf32> to vector<16x128xf32>
    %5 = arith.addf %2, %4 : vector<16x128xf32>
    %c0_5 = arith.constant 0 : index
    %c0_6 = arith.constant 0 : index
    %6 = vector.load %arg4[%c0_5, %c0_6] : memref<16x128xf32, #tpu.memory_space<vmem>>, vector<16x128xf32>
    tpu.vector_store %arg4[%c0_5, %c0_6], %5 {strides = array<i32>} : memref<16x128xf32, #tpu.memory_space<vmem>>, vector<16x128xf32>,
    return
  }
  func.func @transform_0(%arg0: i32) -> (i32, i32) {
    %c0_i32 = arith.constant 0 : i32
    %c0_i32_0 = arith.constant 0 : i32
    return %arg0, %c0_i32 : i32, i32
  }
  func.func @transform_1(%arg0: i32) -> (i32, i32) {
    %c0_i32 = arith.constant 0 : i32
    %c0_i32_0 = arith.constant 0 : i32
    %c0_i32_1 = arith.constant 0 : i32
    return %c0_i32, %c0_i32_0 : i32, i32
  }
  func.func @transform_2(%arg0: i32) -> (i32, i32) {
    %c0_i32 = arith.constant 0 : i32
    %c0_i32_0 = arith.constant 0 : i32
    %c0_i32_1 = arith.constant 0 : i32
    return %c0_i32, %c0_i32_0 : i32, i32
  }
  func.func @transform_3(%arg0: i32) -> (i32, i32) {
    %c0_i32 = arith.constant 0 : i32
    %c0_i32_0 = arith.constant 0 : i32
    return %arg0, %c0_i32 : i32, i32
  }
}

module attributes {stable_mosaic.version = 11 : i64} {
  func.func @_lstm_recurrence_kernel(%arg0: i32, %arg1: memref<8x2x128xf32, #tpu.memory_space<vmem>>, %arg2: memref<32x128xbf16, #tpu.memory_space<vmem>>, %arg3: memref<2x32xf32, #tpu.memory_space<vmem>>, %arg4: memref<2x32xf32, #tpu.memory_space<vmem>>) attributes {dimension_semantics = [#tpu.dimension_semantics<arbitrary>], iteration_bounds = array<i64: 1>, scalar_prefetch = 0 : i64, scratch_operands = 0 : i64, tpu.core_type = #tpu.core_type<tc>, window_params = [{pipeline_mode = #tpu.pipeline_mode<synchronous>, transform_indices = @transform_0, window_bounds = array<i64: 8, 2, 128>}, {pipeline_mode = #tpu.pipeline_mode<synchronous>, transform_indices = @transform_1, window_bounds = array<i64: 32, 128>}, {pipeline_mode = #tpu.pipeline_mode<synchronous>, transform_indices = @transform_2, window_bounds = array<i64: 2, 32>}, {pipeline_mode = #tpu.pipeline_mode<synchronous>, transform_indices = @transform_3, window_bounds = array<i64: 2, 32>}]} {
    %c0 = arith.constant 0 : index
    %c0_0 = arith.constant 0 : index
    %0 = vector.load %arg2[%c0, %c0_0] : memref<32x128xbf16, #tpu.memory_space<vmem>>, vector<32x128xbf16>
    %1 = tpu.iota {dimensions = array<i32: 1>} : vector<2x128xi32>
    %c64_i32 = arith.constant 64 : i32
    %2 = vector.broadcast %c64_i32 : i32 to vector<2x128xi32>
    %3 = arith.cmpi sge, %1, %2 : vector<2x128xi32>
    %c96_i32 = arith.constant 96 : i32
    %4 = vector.broadcast %c96_i32 : i32 to vector<2x128xi32>
    %5 = arith.cmpi slt, %1, %4 : vector<2x128xi32>
    %6 = arith.andi %3, %5 : vector<2x128xi1>
    %cst = arith.constant 0.000000e+00 : f32
    %7 = vector.broadcast %cst : f32 to vector<2x32xf32>
    %cst_1 = arith.constant 0.000000e+00 : f32
    %8 = vector.broadcast %cst_1 : f32 to vector<2x32xf32>
    %c0_i32 = arith.constant 0 : i32
    %9 = arith.index_cast %c0_i32 : i32 to index
    %c0_2 = arith.constant 0 : index
    %c0_3 = arith.constant 0 : index
    %10 = vector.load %arg1[%9, %c0_2, %c0_3] : memref<8x2x128xf32, #tpu.memory_space<vmem>>, vector<1x2x128xf32>
    %11 = vector.shape_cast %10 : vector<1x2x128xf32> to vector<2x128xf32>
    %12 = arith.truncf %7 : vector<2x32xf32> to vector<2x32xbf16>
    %cst_4 = arith.constant dense<0.000000e+00> : vector<2x128xf32>
    %13 = tpu.matmul %12, %0, %cst_4 {dimension_numbers = #tpu.dot_dimension_numbers<[1], [0], [0], [1], [0, 0, 1, 1], [], []>} : vector<2x32xbf16>, vector<32x128xbf16>, vector<2x128xf32> -> vector<2x128xf32>
    %14 = arith.addf %11, %13 : vector<2x128xf32>
    %15 = math.tanh %14 : vector<2x128xf32>
    %16 = arith.negf %14 : vector<2x128xf32>
    %17 = math.exp %16 : vector<2x128xf32>
    %cst_5 = arith.constant 1.000000e+00 : f32
    %18 = vector.broadcast %cst_5 : f32 to vector<2x128xf32>
    %19 = arith.addf %18, %17 : vector<2x128xf32>
    %20 = arith.divf %18, %19 : vector<2x128xf32>
    %21 = arith.select %6, %15, %20 : vector<2x128xi1>, vector<2x128xf32>
    %22 = vector.extract_strided_slice %21 {offsets = [0, 0], sizes = [2, 32], strides = [1, 1]} : vector<2x128xf32> to vector<2x32xf32>
    %23 = vector.extract_strided_slice %21 {offsets = [0, 32], sizes = [2, 32], strides = [1, 1]} : vector<2x128xf32> to vector<2x32xf32>
    %24 = vector.extract_strided_slice %21 {offsets = [0, 64], sizes = [2, 32], strides = [1, 1]} : vector<2x128xf32> to vector<2x32xf32>
    %25 = vector.extract_strided_slice %21 {offsets = [0, 96], sizes = [2, 32], strides = [1, 1]} : vector<2x128xf32> to vector<2x32xf32>
    %26 = arith.mulf %23, %8 : vector<2x32xf32>
    %27 = arith.mulf %22, %24 : vector<2x32xf32>
    %28 = arith.addf %26, %27 : vector<2x32xf32>
    %29 = math.tanh %28 : vector<2x32xf32>
    %30 = arith.mulf %25, %29 : vector<2x32xf32>
    %c1_i32 = arith.constant 1 : i32
    %31 = arith.index_cast %c1_i32 : i32 to index
    %c0_6 = arith.constant 0 : index
    %c0_7 = arith.constant 0 : index
    %32 = vector.load %arg1[%31, %c0_6, %c0_7] : memref<8x2x128xf32, #tpu.memory_space<vmem>>, vector<1x2x128xf32>
    %33 = vector.shape_cast %32 : vector<1x2x128xf32> to vector<2x128xf32>
    %34 = arith.truncf %30 : vector<2x32xf32> to vector<2x32xbf16>
    %cst_8 = arith.constant dense<0.000000e+00> : vector<2x128xf32>
    %35 = tpu.matmul %34, %0, %cst_8 {dimension_numbers = #tpu.dot_dimension_numbers<[1], [0], [0], [1], [0, 0, 1, 1], [], []>} : vector<2x32xbf16>, vector<32x128xbf16>, vector<2x128xf32> -> vector<2x128xf32>
    %36 = arith.addf %33, %35 : vector<2x128xf32>
    %37 = math.tanh %36 : vector<2x128xf32>
    %38 = arith.negf %36 : vector<2x128xf32>
    %39 = math.exp %38 : vector<2x128xf32>
    %cst_9 = arith.constant 1.000000e+00 : f32
    %40 = vector.broadcast %cst_9 : f32 to vector<2x128xf32>
    %41 = arith.addf %40, %39 : vector<2x128xf32>
    %42 = arith.divf %40, %41 : vector<2x128xf32>
    %43 = arith.select %6, %37, %42 : vector<2x128xi1>, vector<2x128xf32>
    %44 = vector.extract_strided_slice %43 {offsets = [0, 0], sizes = [2, 32], strides = [1, 1]} : vector<2x128xf32> to vector<2x32xf32>
    %45 = vector.extract_strided_slice %43 {offsets = [0, 32], sizes = [2, 32], strides = [1, 1]} : vector<2x128xf32> to vector<2x32xf32>
    %46 = vector.extract_strided_slice %43 {offsets = [0, 64], sizes = [2, 32], strides = [1, 1]} : vector<2x128xf32> to vector<2x32xf32>
    %47 = vector.extract_strided_slice %43 {offsets = [0, 96], sizes = [2, 32], strides = [1, 1]} : vector<2x128xf32> to vector<2x32xf32>
    %48 = arith.mulf %45, %28 : vector<2x32xf32>
    %49 = arith.mulf %44, %46 : vector<2x32xf32>
    %50 = arith.addf %48, %49 : vector<2x32xf32>
    %51 = math.tanh %50 : vector<2x32xf32>
    %52 = arith.mulf %47, %51 : vector<2x32xf32>
    %c2_i32 = arith.constant 2 : i32
    %53 = arith.index_cast %c2_i32 : i32 to index
    %c0_10 = arith.constant 0 : index
    %c0_11 = arith.constant 0 : index
    %54 = vector.load %arg1[%53, %c0_10, %c0_11] : memref<8x2x128xf32, #tpu.memory_space<vmem>>, vector<1x2x128xf32>
    %55 = vector.shape_cast %54 : vector<1x2x128xf32> to vector<2x128xf32>
    %56 = arith.truncf %52 : vector<2x32xf32> to vector<2x32xbf16>
    %cst_12 = arith.constant dense<0.000000e+00> : vector<2x128xf32>
    %57 = tpu.matmul %56, %0, %cst_12 {dimension_numbers = #tpu.dot_dimension_numbers<[1], [0], [0], [1], [0, 0, 1, 1], [], []>} : vector<2x32xbf16>, vector<32x128xbf16>, vector<2x128xf32> -> vector<2x128xf32>
    %58 = arith.addf %55, %57 : vector<2x128xf32>
    %59 = math.tanh %58 : vector<2x128xf32>
    %60 = arith.negf %58 : vector<2x128xf32>
    %61 = math.exp %60 : vector<2x128xf32>
    %cst_13 = arith.constant 1.000000e+00 : f32
    %62 = vector.broadcast %cst_13 : f32 to vector<2x128xf32>
    %63 = arith.addf %62, %61 : vector<2x128xf32>
    %64 = arith.divf %62, %63 : vector<2x128xf32>
    %65 = arith.select %6, %59, %64 : vector<2x128xi1>, vector<2x128xf32>
    %66 = vector.extract_strided_slice %65 {offsets = [0, 0], sizes = [2, 32], strides = [1, 1]} : vector<2x128xf32> to vector<2x32xf32>
    %67 = vector.extract_strided_slice %65 {offsets = [0, 32], sizes = [2, 32], strides = [1, 1]} : vector<2x128xf32> to vector<2x32xf32>
    %68 = vector.extract_strided_slice %65 {offsets = [0, 64], sizes = [2, 32], strides = [1, 1]} : vector<2x128xf32> to vector<2x32xf32>
    %69 = vector.extract_strided_slice %65 {offsets = [0, 96], sizes = [2, 32], strides = [1, 1]} : vector<2x128xf32> to vector<2x32xf32>
    %70 = arith.mulf %67, %50 : vector<2x32xf32>
    %71 = arith.mulf %66, %68 : vector<2x32xf32>
    %72 = arith.addf %70, %71 : vector<2x32xf32>
    %73 = math.tanh %72 : vector<2x32xf32>
    %74 = arith.mulf %69, %73 : vector<2x32xf32>
    %c3_i32 = arith.constant 3 : i32
    %75 = arith.index_cast %c3_i32 : i32 to index
    %c0_14 = arith.constant 0 : index
    %c0_15 = arith.constant 0 : index
    %76 = vector.load %arg1[%75, %c0_14, %c0_15] : memref<8x2x128xf32, #tpu.memory_space<vmem>>, vector<1x2x128xf32>
    %77 = vector.shape_cast %76 : vector<1x2x128xf32> to vector<2x128xf32>
    %78 = arith.truncf %74 : vector<2x32xf32> to vector<2x32xbf16>
    %cst_16 = arith.constant dense<0.000000e+00> : vector<2x128xf32>
    %79 = tpu.matmul %78, %0, %cst_16 {dimension_numbers = #tpu.dot_dimension_numbers<[1], [0], [0], [1], [0, 0, 1, 1], [], []>} : vector<2x32xbf16>, vector<32x128xbf16>, vector<2x128xf32> -> vector<2x128xf32>
    %80 = arith.addf %77, %79 : vector<2x128xf32>
    %81 = math.tanh %80 : vector<2x128xf32>
    %82 = arith.negf %80 : vector<2x128xf32>
    %83 = math.exp %82 : vector<2x128xf32>
    %cst_17 = arith.constant 1.000000e+00 : f32
    %84 = vector.broadcast %cst_17 : f32 to vector<2x128xf32>
    %85 = arith.addf %84, %83 : vector<2x128xf32>
    %86 = arith.divf %84, %85 : vector<2x128xf32>
    %87 = arith.select %6, %81, %86 : vector<2x128xi1>, vector<2x128xf32>
    %88 = vector.extract_strided_slice %87 {offsets = [0, 0], sizes = [2, 32], strides = [1, 1]} : vector<2x128xf32> to vector<2x32xf32>
    %89 = vector.extract_strided_slice %87 {offsets = [0, 32], sizes = [2, 32], strides = [1, 1]} : vector<2x128xf32> to vector<2x32xf32>
    %90 = vector.extract_strided_slice %87 {offsets = [0, 64], sizes = [2, 32], strides = [1, 1]} : vector<2x128xf32> to vector<2x32xf32>
    %91 = vector.extract_strided_slice %87 {offsets = [0, 96], sizes = [2, 32], strides = [1, 1]} : vector<2x128xf32> to vector<2x32xf32>
    %92 = arith.mulf %89, %72 : vector<2x32xf32>
    %93 = arith.mulf %88, %90 : vector<2x32xf32>
    %94 = arith.addf %92, %93 : vector<2x32xf32>
    %95 = math.tanh %94 : vector<2x32xf32>
    %96 = arith.mulf %91, %95 : vector<2x32xf32>
    %c4_i32 = arith.constant 4 : i32
    %97 = arith.index_cast %c4_i32 : i32 to index
    %c0_18 = arith.constant 0 : index
    %c0_19 = arith.constant 0 : index
    %98 = vector.load %arg1[%97, %c0_18, %c0_19] : memref<8x2x128xf32, #tpu.memory_space<vmem>>, vector<1x2x128xf32>
    %99 = vector.shape_cast %98 : vector<1x2x128xf32> to vector<2x128xf32>
    %100 = arith.truncf %96 : vector<2x32xf32> to vector<2x32xbf16>
    %cst_20 = arith.constant dense<0.000000e+00> : vector<2x128xf32>
    %101 = tpu.matmul %100, %0, %cst_20 {dimension_numbers = #tpu.dot_dimension_numbers<[1], [0], [0], [1], [0, 0, 1, 1], [], []>} : vector<2x32xbf16>, vector<32x128xbf16>, vector<2x128xf32> -> vector<2x128xf32>
    %102 = arith.addf %99, %101 : vector<2x128xf32>
    %103 = math.tanh %102 : vector<2x128xf32>
    %104 = arith.negf %102 : vector<2x128xf32>
    %105 = math.exp %104 : vector<2x128xf32>
    %cst_21 = arith.constant 1.000000e+00 : f32
    %106 = vector.broadcast %cst_21 : f32 to vector<2x128xf32>
    %107 = arith.addf %106, %105 : vector<2x128xf32>
    %108 = arith.divf %106, %107 : vector<2x128xf32>
    %109 = arith.select %6, %103, %108 : vector<2x128xi1>, vector<2x128xf32>
    %110 = vector.extract_strided_slice %109 {offsets = [0, 0], sizes = [2, 32], strides = [1, 1]} : vector<2x128xf32> to vector<2x32xf32>
    %111 = vector.extract_strided_slice %109 {offsets = [0, 32], sizes = [2, 32], strides = [1, 1]} : vector<2x128xf32> to vector<2x32xf32>
    %112 = vector.extract_strided_slice %109 {offsets = [0, 64], sizes = [2, 32], strides = [1, 1]} : vector<2x128xf32> to vector<2x32xf32>
    %113 = vector.extract_strided_slice %109 {offsets = [0, 96], sizes = [2, 32], strides = [1, 1]} : vector<2x128xf32> to vector<2x32xf32>
    %114 = arith.mulf %111, %94 : vector<2x32xf32>
    %115 = arith.mulf %110, %112 : vector<2x32xf32>
    %116 = arith.addf %114, %115 : vector<2x32xf32>
    %117 = math.tanh %116 : vector<2x32xf32>
    %118 = arith.mulf %113, %117 : vector<2x32xf32>
    %c5_i32 = arith.constant 5 : i32
    %119 = arith.index_cast %c5_i32 : i32 to index
    %c0_22 = arith.constant 0 : index
    %c0_23 = arith.constant 0 : index
    %120 = vector.load %arg1[%119, %c0_22, %c0_23] : memref<8x2x128xf32, #tpu.memory_space<vmem>>, vector<1x2x128xf32>
    %121 = vector.shape_cast %120 : vector<1x2x128xf32> to vector<2x128xf32>
    %122 = arith.truncf %118 : vector<2x32xf32> to vector<2x32xbf16>
    %cst_24 = arith.constant dense<0.000000e+00> : vector<2x128xf32>
    %123 = tpu.matmul %122, %0, %cst_24 {dimension_numbers = #tpu.dot_dimension_numbers<[1], [0], [0], [1], [0, 0, 1, 1], [], []>} : vector<2x32xbf16>, vector<32x128xbf16>, vector<2x128xf32> -> vector<2x128xf32>
    %124 = arith.addf %121, %123 : vector<2x128xf32>
    %125 = math.tanh %124 : vector<2x128xf32>
    %126 = arith.negf %124 : vector<2x128xf32>
    %127 = math.exp %126 : vector<2x128xf32>
    %cst_25 = arith.constant 1.000000e+00 : f32
    %128 = vector.broadcast %cst_25 : f32 to vector<2x128xf32>
    %129 = arith.addf %128, %127 : vector<2x128xf32>
    %130 = arith.divf %128, %129 : vector<2x128xf32>
    %131 = arith.select %6, %125, %130 : vector<2x128xi1>, vector<2x128xf32>
    %132 = vector.extract_strided_slice %131 {offsets = [0, 0], sizes = [2, 32], strides = [1, 1]} : vector<2x128xf32> to vector<2x32xf32>
    %133 = vector.extract_strided_slice %131 {offsets = [0, 32], sizes = [2, 32], strides = [1, 1]} : vector<2x128xf32> to vector<2x32xf32>
    %134 = vector.extract_strided_slice %131 {offsets = [0, 64], sizes = [2, 32], strides = [1, 1]} : vector<2x128xf32> to vector<2x32xf32>
    %135 = vector.extract_strided_slice %131 {offsets = [0, 96], sizes = [2, 32], strides = [1, 1]} : vector<2x128xf32> to vector<2x32xf32>
    %136 = arith.mulf %133, %116 : vector<2x32xf32>
    %137 = arith.mulf %132, %134 : vector<2x32xf32>
    %138 = arith.addf %136, %137 : vector<2x32xf32>
    %139 = math.tanh %138 : vector<2x32xf32>
    %140 = arith.mulf %135, %139 : vector<2x32xf32>
    %c6_i32 = arith.constant 6 : i32
    %141 = arith.index_cast %c6_i32 : i32 to index
    %c0_26 = arith.constant 0 : index
    %c0_27 = arith.constant 0 : index
    %142 = vector.load %arg1[%141, %c0_26, %c0_27] : memref<8x2x128xf32, #tpu.memory_space<vmem>>, vector<1x2x128xf32>
    %143 = vector.shape_cast %142 : vector<1x2x128xf32> to vector<2x128xf32>
    %144 = arith.truncf %140 : vector<2x32xf32> to vector<2x32xbf16>
    %cst_28 = arith.constant dense<0.000000e+00> : vector<2x128xf32>
    %145 = tpu.matmul %144, %0, %cst_28 {dimension_numbers = #tpu.dot_dimension_numbers<[1], [0], [0], [1], [0, 0, 1, 1], [], []>} : vector<2x32xbf16>, vector<32x128xbf16>, vector<2x128xf32> -> vector<2x128xf32>
    %146 = arith.addf %143, %145 : vector<2x128xf32>
    %147 = math.tanh %146 : vector<2x128xf32>
    %148 = arith.negf %146 : vector<2x128xf32>
    %149 = math.exp %148 : vector<2x128xf32>
    %cst_29 = arith.constant 1.000000e+00 : f32
    %150 = vector.broadcast %cst_29 : f32 to vector<2x128xf32>
    %151 = arith.addf %150, %149 : vector<2x128xf32>
    %152 = arith.divf %150, %151 : vector<2x128xf32>
    %153 = arith.select %6, %147, %152 : vector<2x128xi1>, vector<2x128xf32>
    %154 = vector.extract_strided_slice %153 {offsets = [0, 0], sizes = [2, 32], strides = [1, 1]} : vector<2x128xf32> to vector<2x32xf32>
    %155 = vector.extract_strided_slice %153 {offsets = [0, 32], sizes = [2, 32], strides = [1, 1]} : vector<2x128xf32> to vector<2x32xf32>
    %156 = vector.extract_strided_slice %153 {offsets = [0, 64], sizes = [2, 32], strides = [1, 1]} : vector<2x128xf32> to vector<2x32xf32>
    %157 = vector.extract_strided_slice %153 {offsets = [0, 96], sizes = [2, 32], strides = [1, 1]} : vector<2x128xf32> to vector<2x32xf32>
    %158 = arith.mulf %155, %138 : vector<2x32xf32>
    %159 = arith.mulf %154, %156 : vector<2x32xf32>
    %160 = arith.addf %158, %159 : vector<2x32xf32>
    %161 = math.tanh %160 : vector<2x32xf32>
    %162 = arith.mulf %157, %161 : vector<2x32xf32>
    %c7_i32 = arith.constant 7 : i32
    %163 = arith.index_cast %c7_i32 : i32 to index
    %c0_30 = arith.constant 0 : index
    %c0_31 = arith.constant 0 : index
    %164 = vector.load %arg1[%163, %c0_30, %c0_31] : memref<8x2x128xf32, #tpu.memory_space<vmem>>, vector<1x2x128xf32>
    %165 = vector.shape_cast %164 : vector<1x2x128xf32> to vector<2x128xf32>
    %166 = arith.truncf %162 : vector<2x32xf32> to vector<2x32xbf16>
    %cst_32 = arith.constant dense<0.000000e+00> : vector<2x128xf32>
    %167 = tpu.matmul %166, %0, %cst_32 {dimension_numbers = #tpu.dot_dimension_numbers<[1], [0], [0], [1], [0, 0, 1, 1], [], []>} : vector<2x32xbf16>, vector<32x128xbf16>, vector<2x128xf32> -> vector<2x128xf32>
    %168 = arith.addf %165, %167 : vector<2x128xf32>
    %169 = math.tanh %168 : vector<2x128xf32>
    %170 = arith.negf %168 : vector<2x128xf32>
    %171 = math.exp %170 : vector<2x128xf32>
    %cst_33 = arith.constant 1.000000e+00 : f32
    %172 = vector.broadcast %cst_33 : f32 to vector<2x128xf32>
    %173 = arith.addf %172, %171 : vector<2x128xf32>
    %174 = arith.divf %172, %173 : vector<2x128xf32>
    %175 = arith.select %6, %169, %174 : vector<2x128xi1>, vector<2x128xf32>
    %176 = vector.extract_strided_slice %175 {offsets = [0, 0], sizes = [2, 32], strides = [1, 1]} : vector<2x128xf32> to vector<2x32xf32>
    %177 = vector.extract_strided_slice %175 {offsets = [0, 32], sizes = [2, 32], strides = [1, 1]} : vector<2x128xf32> to vector<2x32xf32>
    %178 = vector.extract_strided_slice %175 {offsets = [0, 64], sizes = [2, 32], strides = [1, 1]} : vector<2x128xf32> to vector<2x32xf32>
    %179 = vector.extract_strided_slice %175 {offsets = [0, 96], sizes = [2, 32], strides = [1, 1]} : vector<2x128xf32> to vector<2x32xf32>
    %180 = arith.mulf %177, %160 : vector<2x32xf32>
    %181 = arith.mulf %176, %178 : vector<2x32xf32>
    %182 = arith.addf %180, %181 : vector<2x32xf32>
    %183 = math.tanh %182 : vector<2x32xf32>
    %184 = arith.mulf %179, %183 : vector<2x32xf32>
    %c8_i32 = arith.constant 8 : i32
    %c0_34 = arith.constant 0 : index
    %c0_35 = arith.constant 0 : index
    %185 = vector.load %arg3[%c0_34, %c0_35] : memref<2x32xf32, #tpu.memory_space<vmem>>, vector<2x32xf32>
    tpu.vector_store %arg3[%c0_34, %c0_35], %184 {strides = array<i32>} : memref<2x32xf32, #tpu.memory_space<vmem>>, vector<2x32xf32>,
    %c0_36 = arith.constant 0 : index
    %c0_37 = arith.constant 0 : index
    %186 = vector.load %arg4[%c0_36, %c0_37] : memref<2x32xf32, #tpu.memory_space<vmem>>, vector<2x32xf32>
    tpu.vector_store %arg4[%c0_36, %c0_37], %182 {strides = array<i32>} : memref<2x32xf32, #tpu.memory_space<vmem>>, vector<2x32xf32>,
    return
  }
  func.func @transform_0(%arg0: i32) -> (i32, i32, i32) {
    %c0_i32 = arith.constant 0 : i32
    %c0_i32_0 = arith.constant 0 : i32
    %c0_i32_1 = arith.constant 0 : i32
    %c0_i32_2 = arith.constant 0 : i32
    return %c0_i32, %c0_i32_0, %c0_i32_1 : i32, i32, i32
  }
  func.func @transform_1(%arg0: i32) -> (i32, i32) {
    %c0_i32 = arith.constant 0 : i32
    %c0_i32_0 = arith.constant 0 : i32
    %c0_i32_1 = arith.constant 0 : i32
    return %c0_i32, %c0_i32_0 : i32, i32
  }
  func.func @transform_2(%arg0: i32) -> (i32, i32) {
    %c0_i32 = arith.constant 0 : i32
    %c0_i32_0 = arith.constant 0 : i32
    %c0_i32_1 = arith.constant 0 : i32
    return %c0_i32, %c0_i32_0 : i32, i32
  }
  func.func @transform_3(%arg0: i32) -> (i32, i32) {
    %c0_i32 = arith.constant 0 : i32
    %c0_i32_0 = arith.constant 0 : i32
    %c0_i32_1 = arith.constant 0 : i32
    return %c0_i32, %c0_i32_0 : i32, i32
  }
}

</mosaic_0001>

<bundles_post_ra>
// kernel: encoder_forward.2
= control target key start
LH: loop header
LB: loop body
LE: loop exit
PB: predicated region body
PF: predicated region fallthrough
CT: control target
= control target key end

     0   :  { %v104_v0 = vmov 0.0   ;;  %vm105_vm0 = vmmov 0   ;;  %vm37_vm1 = vcmask 130048   ;;  %s141_s1 = inlined_call_operand.vmem [shape: bf16[16,128], index: 1, kind: input, shape index: {}]   ;;  %s142_s0 = inlined_call_operand.vmem [shape: bf16[16,16], index: 0, kind: input, shape index: {}]   ;;  %s143_s2 = inlined_call_operand.vmem [shape: f32[1,128], index: 2, kind: input, shape index: {}]   ;;  %s144_s3 = inlined_call_operand.vmem [shape: f32[16,128], index: 3, kind: output, shape index: {}]  }
   0x1   :  { %94 = vmatprep.subr.bf16.mxu0 %v104_v0  ;;  %v102_v1 = vld [vmem:[%s141_s1] sm:$0xff]   ;;  %96 = vmatprep.mubr.msk.bf16.mxu0 %vm105_vm0, %v104_v0 }
   0x2   :  { %v103_v2 = vld [vmem:[%s142_s0] sm:$0xff]   ;;  %95 = vmatpush3.bf16.msra.mxu0 %v102_v1 }
   0x3   :  { %v88_v3 = vld [vmem:[%s143_s2] ss:$0 sm:$0xff] }
   0x5   :  { %97 = vmatmul.mubr.msk.bf16.vlgmr.msra.gmra.mrb[0].mxu0 %vm37_vm1, %v103_v2 }
  0xd8   :  { %v75_v4 = vpop.f32.mrb[0].mxu0 }
  0xd9   :  { %v76_v5 = vadd.f32 %v88_v3, %v75_v4  ;;  %v98_v6 = vpop.f32.mrb[1].mxu0 }
  0xda   :  { %v78_v7 = vpop.f32.mrb[2].mxu0 }
  0xdb   :  { %82 = vst [vmem:[%s144_s3] sm:$0xff] %v76_v5  ;;  %v79_v8 = vadd.f32 %v88_v3, %v78_v7  ;;  %v99_v9 = vpop.f32.mrb[3].mxu0 }
  0xdd   :  { %83 = vst [vmem:[%s144_s3 + $0x8] sm:$0xff] %v79_v8 }

// kernel: encoder_forward.3
= control target key start
LH: loop header
LB: loop body
LE: loop exit
PB: predicated region body
PF: predicated region fallthrough
CT: control target
= control target key end

     0   :  { %9 = vsyncpa [#allocation3], 0  ;;  %v906_v1 = vmov 0.0   ;;  %vm907_vm0 = vmmov 0   ;;  %s1101_s0 = inlined_call_operand.vmem [shape: f32[8,2,128], index: 0, kind: input, shape index: {}]   ;;  %s1102_s1 = inlined_call_operand.vmem [shape: bf16[32,128], index: 1, kind: input, shape index: {}]   ;;  %s1103_s2 = inlined_call_operand.hbm [shape: f32[2,32], index: 2, kind: output, shape index: {0}]   ;;  %s1104_s3 = inlined_call_operand.hbm [shape: f32[2,32], index: 3, kind: output, shape index: {1}]  }
   0x1   :  { %v937_v0 = vld [vmem:[%s1102_s1] sm:$0xff]   ;;  %720 = vmatprep.subr.bf16.mxu0 %v906_v1  ;;  %728 = vmatprep.subr.bf16.mxu1 %v906_v1  ;;  %v945_v2 = vld [vmem:[%s1102_s1 + $0x8] sm:$0xff]  }
   0x2   :  { %721 = vmatpush3.bf16.msra.mxu0 %v937_v0  ;;  %724 = vmatprep.mubr.msk.bf16.mxu0 %vm907_vm0, %v906_v1 }
   0x3   :  { %10 = vsyncpa [#allocation5], 0  ;;  %722 = vmatprep.subr.bf16.mxu0 %v906_v1  ;;  %729 = vmatpush3.bf16.msra.mxu1 %v937_v0  ;;  %v908_v3 = vmov 0   ;;  %v25_v4 = vld [vmem:[%s1101_s0] sm:$0x3]  ;;  %v20_v12 = vlaneseq  ;;  %s909_s17 = smov 64  }
   0x4   :  { %730 = vmatprep.subr.bf16.mxu1 %v906_v1  ;;  %732 = vmatprep.mubr.msk.bf16.mxu1 %vm907_vm0, %v906_v1  ;;  %s910_s18 = smov 32   ;;  %vm38_vm4 = vcmask 261120   ;;  %v675_v29 = vld [vmem:[%s1101_s0 + $0x2] sm:$0x3]  ;;  %v678_v51 = vld [vmem:[%s1101_s0 + $0x4] sm:$0x3] }
   0x5   :  { %v21_v14 = vand.u32 127, %v20_v12  ;;  %v681_v12 = vld [vmem:[%s1101_s0 + $0x6] sm:$0x3]  ;;  %s912_s6 = smov [#allocation4]   ;;  %vm637_vm5 = vcmask 254976  }
   0x6   :  { %723 = vmatpush3.bf16.msra.mxu0 %v945_v2  ;;  %s660_s7 = sshll.u32 %s912_s6, 4  ;;  %s661_s7 = int_to_ptr.vmem [resolvable:$true] %s660_s7 }
   0x7   :  { %731 = vmatpush3.bf16.msra.mxu1 %v945_v2  ;;  %736 = vmatprep.subr.bf16.mxu0 %v906_v1  ;;  %vm22_vm1 = vcmp.ge.s32.totalorder %v21_v14, 64  ;;  %vm23_vm2 = vcmp.lt.s32.totalorder %v21_v14, 96  ;;  %s858_s8 = scalar_lea.vmem %s661_s7, 32  ;;  %p863_p1 = scmp.lt.s32.totalorder %s661_s7, %s661_s7 }
   0x8   :  { %744 = vmatprep.subr.bf16.mxu1 %v906_v1  ;;  %vm967_vm3 = vmand %vm22_vm1, %vm23_vm2  ;;  %p859_p0 = scmp.ne.s32.totalorder %s661_s7, %s858_s8  ;;  %p864_p2 = scmp.lt.s32.totalorder %s858_s8, %s858_s8 }
   0x9   :  { %725 = vmatmul.mubr.bf16.vlgmr.msra.gmra.mrb[0].mxu0 %v908_v3 }
   0xa   :  { %737 = vmatpush3.bf16.msra.mxu0 %v937_v0  ;;  %740 = vmatprep.mubr.msk.bf16.mxu0 %vm907_vm0, %v906_v1  ;;  %p865_p3 = por %p864_p2, %p863_p1 }
   0xb   :  { %738 = vmatprep.subr.bf16.mxu0 %v906_v1 }
   0xc   :  { %p866_p4 = pnand %p865_p3, %p859_p0 }
   0xe   :  { %739 = vmatpush3.bf16.msra.mxu0 %v945_v2 }
   0xf   :  { %752 = vmatprep.subr.bf16.mxu0 %v906_v1 }
  0xdc   :  { %v76_v5 = vpop.f32.mrb[0].mxu0 }
  0xdd   :  { %v82_v6 = vadd.f32 %v76_v5, %v25_v4  ;;  %v726_v7 = vpop.f32.mrb[1].mxu0 }
  0xde   :  { %v79_v8 = vpop.f32.mrb[2].mxu0 }
  0xdf   :  { %v674_v9 = vmul.f32 -1.442695, %v82_v6  ;;  %v727_v10 = vpop.f32.mrb[3].mxu0 }
  0xe1   :  { %794 = vpow2.f32 %v674_v9 }
  0xe2   :  { %796 = vtanh.f32 %v82_v6 }
  0xeb   :  { %v795_v11 = vpop.eup %794 }
  0xec   :  { %v87_v13 = vadd.f32 1.0, %v795_v11  ;;  %v797_v16 = vpop.eup %796 }
  0xee   :  { %798 = vrcp.f32 %v87_v13 }
  0xf8   :  { %v799_v17 = vpop.eup %798 }
  0xf9   :  { %v90_v18 = vsel %vm967_vm3, %v797_v16, %v799_v17 }
  0xfa   :  { %93 = vrot.lane.b32.xlu0 %v90_v18, %s909_s17  ;;  %v91_v21 = vmul.f32 0.0, %v90_v18 }
 0x16c   :  { %v94_v19 = vpop.permute.xlu0 %93 }
 0x16d   :  { %v96_v20 = vmul.f32 %v94_v19, %v90_v18 }
 0x16f   :  { %98 = vrot.lane.b32.xlu0 %v96_v20, %s910_s18 }
 0x1e1   :  { %v99_v22 = vpop.permute.xlu0 %98 }
 0x1e2   :  { %v101_v23 = vadd.f32 %v99_v22, %v91_v21 }
 0x1e4   :  { %800 = vtanh.f32 %v101_v23 }
 0x1ee   :  { %v801_v24 = vpop.eup %800 }
 0x1ef   :  { %104 = vrot.lane.b32.xlu1 %v801_v24, %s909_s17 }
 0x261   :  { %v105_v25 = vpop.permute.xlu1 %104 }
 0x262   :  { %v107_v26 = vmul.f32 %v105_v25, %v90_v18 }
 0x264   :  { %v110_v27 = vpack.c.bf16 %v107_v26, %v107_v26 }
 0x266   :  { %112 = vrot.lane.b32.xlu1 %v110_v27, %s910_s18 }
 0x2d8   :  { %v113_v28 = vpop.permute.xlu1 %112 }
 0x2d9   :  { %733 = vmatmul.mubr.msk.bf16.vlgmr.msra.gmra.mrb[0].mxu1 %vm38_vm4, %v113_v28 }
 0x2da   :  { %745 = vmatpush3.bf16.msra.mxu1 %v937_v0  ;;  %748 = vmatprep.mubr.msk.bf16.mxu1 %vm907_vm0, %v906_v1 }
 0x2db   :  { %746 = vmatprep.subr.bf16.mxu1 %v906_v1 }
 0x2de   :  { %747 = vmatpush3.bf16.msra.mxu1 %v945_v2 }
 0x2df   :  { %760 = vmatprep.subr.bf16.mxu1 %v906_v1 }
 0x3ac   :  { %v151_v30 = vpop.f32.mrb[0].mxu1 }
 0x3ad   :  { %v157_v31 = vadd.f32 %v675_v29, %v151_v30  ;;  %v734_v32 = vpop.f32.mrb[1].mxu1 }
 0x3ae   :  { %v154_v33 = vpop.f32.mrb[2].mxu1 }
 0x3af   :  { %v677_v34 = vmul.f32 -1.442695, %v157_v31  ;;  %v735_v35 = vpop.f32.mrb[3].mxu1 }
 0x3b0   :  { %v684_v35 = vld [vmem:[%s1101_s0 + $0x8] sm:$0x3] }
 0x3b1   :  { %802 = vpow2.f32 %v677_v34 }
 0x3b2   :  { %804 = vtanh.f32 %v157_v31 }
 0x3bb   :  { %v803_v36 = vpop.eup %802 }
 0x3bc   :  { %v162_v37 = vadd.f32 1.0, %v803_v36  ;;  %v805_v38 = vpop.eup %804 }
 0x3be   :  { %806 = vrcp.f32 %v162_v37 }
 0x3c8   :  { %v807_v39 = vpop.eup %806 }
 0x3c9   :  { %v165_v40 = vsel %vm967_vm3, %v805_v38, %v807_v39 }
 0x3ca   :  { %168 = vrot.lane.b32.xlu0 %v165_v40, %s909_s17  ;;  %v166_v43 = vmul.f32 %v165_v40, %v101_v23 }
 0x43c   :  { %v169_v41 = vpop.permute.xlu0 %168 }
 0x43d   :  { %v171_v42 = vmul.f32 %v169_v41, %v165_v40 }
 0x43f   :  { %173 = vrot.lane.b32.xlu1 %v171_v42, %s910_s18 }
 0x4b1   :  { %v174_v44 = vpop.permute.xlu1 %173 }
 0x4b2   :  { %v176_v45 = vadd.f32 %v174_v44, %v166_v43 }
 0x4b4   :  { %808 = vtanh.f32 %v176_v45 }
 0x4be   :  { %v809_v46 = vpop.eup %808 }
 0x4bf   :  { %179 = vrot.lane.b32.xlu0 %v809_v46, %s909_s17 }
 0x531   :  { %v180_v47 = vpop.permute.xlu0 %179 }
 0x532   :  { %v182_v48 = vmul.f32 %v180_v47, %v165_v40 }
 0x534   :  { %v185_v49 = vpack.c.bf16 %v182_v48, %v182_v48 }
 0x536   :  { %187 = vrot.lane.b32.xlu1 %v185_v49, %s910_s18 }
 0x5a8   :  { %v188_v50 = vpop.permute.xlu1 %187 }
 0x5a9   :  { %741 = vmatmul.mubr.msk.bf16.vlgmr.msra.gmra.mrb[4].mxu0 %vm38_vm4, %v188_v50 }
 0x5aa   :  { %753 = vmatpush3.bf16.msra.mxu0 %v937_v0  ;;  %756 = vmatprep.mubr.msk.bf16.mxu0 %vm907_vm0, %v906_v1 }
 0x5ab   :  { %754 = vmatprep.subr.bf16.mxu0 %v906_v1 }
 0x5ae   :  { %755 = vmatpush3.bf16.msra.mxu0 %v945_v2 }
 0x5af   :  { %768 = vmatprep.subr.bf16.mxu0 %v906_v1 }
 0x67c   :  { %v226_v52 = vpop.f32.mrb[4].mxu0 }
 0x67d   :  { %v232_v53 = vadd.f32 %v678_v51, %v226_v52  ;;  %v742_v54 = vpop.f32.mrb[5].mxu0 }
 0x67e   :  { %v229_v55 = vpop.f32.mrb[6].mxu0 }
 0x67f   :  { %v680_v56 = vmul.f32 -1.442695, %v232_v53  ;;  %v743_v57 = vpop.f32.mrb[7].mxu0 }
 0x680   :  { %v687_v57 = vld [vmem:[%s1101_s0 + $0xa] sm:$0x3] }
 0x681   :  { %810 = vpow2.f32 %v680_v56 }
 0x682   :  { %812 = vtanh.f32 %v232_v53 }
 0x68b   :  { %v811_v58 = vpop.eup %810 }
 0x68c   :  { %v237_v59 = vadd.f32 1.0, %v811_v58  ;;  %v813_v60 = vpop.eup %812 }
 0x68e   :  { %814 = vrcp.f32 %v237_v59 }
 0x698   :  { %v815_v61 = vpop.eup %814 }
 0x699   :  { %v240_v62 = vsel %vm967_vm3, %v813_v60, %v815_v61 }
 0x69a   :  { %243 = vrot.lane.b32.xlu0 %v240_v62, %s909_s17  ;;  %v241_v4 = vmul.f32 %v240_v62, %v176_v45 }
 0x70c   :  { %v244_v63 = vpop.permute.xlu0 %243 }
 0x70d   :  { %v246_v3 = vmul.f32 %v244_v63, %v240_v62 }
 0x70f   :  { %248 = vrot.lane.b32.xlu1 %v246_v3, %s910_s18 }
 0x781   :  { %v249_v5 = vpop.permute.xlu1 %248 }
 0x782   :  { %v251_v6 = vadd.f32 %v249_v5, %v241_v4 }
 0x784   :  { %816 = vtanh.f32 %v251_v6 }
 0x78e   :  { %v817_v7 = vpop.eup %816 }
 0x78f   :  { %254 = vrot.lane.b32.xlu0 %v817_v7, %s909_s17 }
 0x801   :  { %v255_v8 = vpop.permute.xlu0 %254 }
 0x802   :  { %v257_v9 = vmul.f32 %v255_v8, %v240_v62 }
 0x804   :  { %v260_v10 = vpack.c.bf16 %v257_v9, %v257_v9 }
 0x806   :  { %262 = vrot.lane.b32.xlu1 %v260_v10, %s910_s18 }
 0x878   :  { %v263_v11 = vpop.permute.xlu1 %262 }
 0x879   :  { %749 = vmatmul.mubr.msk.bf16.vlgmr.msra.gmra.mrb[4].mxu1 %vm38_vm4, %v263_v11 }
 0x87a   :  { %761 = vmatpush3.bf16.msra.mxu1 %v937_v0  ;;  %764 = vmatprep.mubr.msk.bf16.mxu1 %vm907_vm0, %v906_v1 }
 0x87b   :  { %762 = vmatprep.subr.bf16.mxu1 %v906_v1 }
 0x87e   :  { %763 = vmatpush3.bf16.msra.mxu1 %v945_v2 }
 0x87f   :  { %776 = vmatprep.subr.bf16.mxu1 %v906_v1 }
 0x94c   :  { %v301_v13 = vpop.f32.mrb[4].mxu1 }
 0x94d   :  { %v307_v14 = vadd.f32 %v681_v12, %v301_v13  ;;  %v750_v16 = vpop.f32.mrb[5].mxu1 }
 0x94e   :  { %v304_v17 = vpop.f32.mrb[6].mxu1  ;;  %v690_v16 = vld [vmem:[%s1101_s0 + $0xc] sm:$0x3] }
 0x94f   :  { %v683_v18 = vmul.f32 -1.442695, %v307_v14  ;;  %v751_v19 = vpop.f32.mrb[7].mxu1 }
 0x951   :  { %818 = vpow2.f32 %v683_v18 }
 0x952   :  { %820 = vtanh.f32 %v307_v14 }
 0x95b   :  { %v819_v20 = vpop.eup %818 }
 0x95c   :  { %v312_v21 = vadd.f32 1.0, %v819_v20  ;;  %v821_v22 = vpop.eup %820 }
 0x95e   :  { %822 = vrcp.f32 %v312_v21 }
 0x968   :  { %v823_v23 = vpop.eup %822 }
 0x969   :  { %v315_v24 = vsel %vm967_vm3, %v821_v22, %v823_v23 }
 0x96a   :  { %318 = vrot.lane.b32.xlu0 %v315_v24, %s909_s17  ;;  %v316_v27 = vmul.f32 %v315_v24, %v251_v6 }
 0x9dc   :  { %v319_v25 = vpop.permute.xlu0 %318 }
 0x9dd   :  { %v321_v26 = vmul.f32 %v319_v25, %v315_v24 }
 0x9df   :  { %323 = vrot.lane.b32.xlu1 %v321_v26, %s910_s18 }
 0xa51   :  { %v324_v28 = vpop.permute.xlu1 %323 }
 0xa52   :  { %v326_v29 = vadd.f32 %v324_v28, %v316_v27 }
 0xa54   :  { %824 = vtanh.f32 %v326_v29 }
 0xa5e   :  { %v825_v30 = vpop.eup %824 }
 0xa5f   :  { %329 = vrot.lane.b32.xlu0 %v825_v30, %s909_s17 }
 0xad1   :  { %v330_v31 = vpop.permute.xlu0 %329 }
 0xad2   :  { %v332_v32 = vmul.f32 %v330_v31, %v315_v24 }
 0xad4   :  { %v335_v33 = vpack.c.bf16 %v332_v32, %v332_v32 }
 0xad6   :  { %337 = vrot.lane.b32.xlu1 %v335_v33, %s910_s18 }
 0xb48   :  { %v338_v34 = vpop.permute.xlu1 %337 }
 0xb49   :  { %757 = vmatmul.mubr.msk.bf16.vlgmr.msra.gmra.mrb[8].mxu0 %vm38_vm4, %v338_v34 }
 0xb4a   :  { %769 = vmatpush3.bf16.msra.mxu0 %v937_v0  ;;  %772 = vmatprep.mubr.msk.bf16.mxu0 %vm907_vm0, %v906_v1 }
 0xb4b   :  { %770 = vmatprep.subr.bf16.mxu0 %v906_v1 }
 0xb4e   :  { %771 = vmatpush3.bf16.msra.mxu0 %v945_v2 }
 0xc1c   :  { %v376_v36 = vpop.f32.mrb[8].mxu0 }
 0xc1d   :  { %v382_v37 = vadd.f32 %v684_v35, %v376_v36  ;;  %v758_v38 = vpop.f32.mrb[9].mxu0 }
 0xc1e   :  { %v379_v39 = vpop.f32.mrb[10].mxu0  ;;  %v693_v38 = vld [vmem:[%s1101_s0 + $0xe] sm:$0x3]  ;;  %s911_s0 = smov 96  }
 0xc1f   :  { %v686_v40 = vmul.f32 -1.442695, %v382_v37  ;;  %v759_v41 = vpop.f32.mrb[11].mxu0 }
 0xc21   :  { %826 = vpow2.f32 %v686_v40 }
 0xc22   :  { %828 = vtanh.f32 %v382_v37 }
 0xc2b   :  { %v827_v42 = vpop.eup %826 }
 0xc2c   :  { %v387_v43 = vadd.f32 1.0, %v827_v42  ;;  %v829_v44 = vpop.eup %828 }
 0xc2e   :  { %830 = vrcp.f32 %v387_v43 }
 0xc38   :  { %v831_v45 = vpop.eup %830 }
 0xc39   :  { %v390_v46 = vsel %vm967_vm3, %v829_v44, %v831_v45 }
 0xc3a   :  { %393 = vrot.lane.b32.xlu0 %v390_v46, %s909_s17  ;;  %v391_v49 = vmul.f32 %v390_v46, %v326_v29 }
 0xcac   :  { %v394_v47 = vpop.permute.xlu0 %393 }
 0xcad   :  { %v396_v48 = vmul.f32 %v394_v47, %v390_v46 }
 0xcaf   :  { %398 = vrot.lane.b32.xlu1 %v396_v48, %s910_s18 }
 0xd21   :  { %v399_v50 = vpop.permute.xlu1 %398 }
 0xd22   :  { %v401_v51 = vadd.f32 %v399_v50, %v391_v49 }
 0xd24   :  { %832 = vtanh.f32 %v401_v51 }
 0xd2e   :  { %v833_v52 = vpop.eup %832 }
 0xd2f   :  { %404 = vrot.lane.b32.xlu0 %v833_v52, %s909_s17 }
 0xda1   :  { %v405_v53 = vpop.permute.xlu0 %404 }
 0xda2   :  { %v407_v54 = vmul.f32 %v405_v53, %v390_v46 }
 0xda4   :  { %v410_v55 = vpack.c.bf16 %v407_v54, %v407_v54 }
 0xda6   :  { %412 = vrot.lane.b32.xlu1 %v410_v55, %s910_s18 }
 0xe18   :  { %v413_v56 = vpop.permute.xlu1 %412 }
 0xe19   :  { %765 = vmatmul.mubr.msk.bf16.vlgmr.msra.gmra.mrb[8].mxu1 %vm38_vm4, %v413_v56 }
 0xe1a   :  { %777 = vmatpush3.bf16.msra.mxu1 %v937_v0  ;;  %780 = vmatprep.mubr.msk.bf16.mxu1 %vm907_vm0, %v906_v1 }
 0xe1b   :  { %778 = vmatprep.subr.bf16.mxu1 %v906_v1 }
 0xe1e   :  { %779 = vmatpush3.bf16.msra.mxu1 %v945_v2 }
 0xeec   :  { %v451_v58 = vpop.f32.mrb[8].mxu1 }
 0xeed   :  { %v457_v59 = vadd.f32 %v687_v57, %v451_v58  ;;  %v766_v60 = vpop.f32.mrb[9].mxu1 }
 0xeee   :  { %v454_v61 = vpop.f32.mrb[10].mxu1 }
 0xeef   :  { %v689_v62 = vmul.f32 -1.442695, %v457_v59  ;;  %v767_v63 = vpop.f32.mrb[11].mxu1 }
 0xef1   :  { %834 = vpow2.f32 %v689_v62 }
 0xef2   :  { %836 = vtanh.f32 %v457_v59 }
 0xefb   :  { %v835_v3 = vpop.eup %834 }
 0xefc   :  { %v462_v0 = vadd.f32 1.0, %v835_v3  ;;  %v837_v4 = vpop.eup %836 }
 0xefe   :  { %838 = vrcp.f32 %v462_v0 }
 0xf08   :  { %v839_v5 = vpop.eup %838 }
 0xf09   :  { %v465_v1 = vsel %vm967_vm3, %v837_v4, %v839_v5 }
 0xf0a   :  { %468 = vrot.lane.b32.xlu0 %v465_v1, %s909_s17  ;;  %v466_v7 = vmul.f32 %v465_v1, %v401_v51 }
 0xf7c   :  { %v469_v2 = vpop.permute.xlu0 %468 }
 0xf7d   :  { %v471_v6 = vmul.f32 %v469_v2, %v465_v1 }
 0xf7f   :  { %473 = vrot.lane.b32.xlu1 %v471_v6, %s910_s18 }
 0xff1   :  { %v474_v8 = vpop.permute.xlu1 %473 }
 0xff2   :  { %v476_v9 = vadd.f32 %v474_v8, %v466_v7 }
 0xff4   :  { %840 = vtanh.f32 %v476_v9 }
 0xffe   :  { %v841_v10 = vpop.eup %840 }
 0xfff   :  { %479 = vrot.lane.b32.xlu0 %v841_v10, %s909_s17 }
0x1071   :  { %v480_v11 = vpop.permute.xlu0 %479 }
0x1072   :  { %v482_v12 = vmul.f32 %v480_v11, %v465_v1 }
0x1074   :  { %v485_v13 = vpack.c.bf16 %v482_v12, %v482_v12 }
0x1076   :  { %487 = vrot.lane.b32.xlu1 %v485_v13, %s910_s18 }
0x10e8   :  { %v488_v14 = vpop.permute.xlu1 %487 }
0x10e9   :  { %773 = vmatmul.mubr.msk.bf16.vlgmr.msra.gmra.mrb[12].mxu0 %vm38_vm4, %v488_v14 }
0x11bc   :  { %v526_v17 = vpop.f32.mrb[12].mxu0 }
0x11bd   :  { %v532_v18 = vadd.f32 %v690_v16, %v526_v17  ;;  %v774_v19 = vpop.f32.mrb[13].mxu0 }
0x11be   :  { %v529_v20 = vpop.f32.mrb[14].mxu0 }
0x11bf   :  { %v692_v21 = vmul.f32 -1.442695, %v532_v18  ;;  %v775_v22 = vpop.f32.mrb[15].mxu0 }
0x11c1   :  { %842 = vpow2.f32 %v692_v21 }
0x11c2   :  { %844 = vtanh.f32 %v532_v18 }
0x11cb   :  { %v843_v23 = vpop.eup %842 }
0x11cc   :  { %v537_v24 = vadd.f32 1.0, %v843_v23  ;;  %v845_v25 = vpop.eup %844 }
0x11ce   :  { %846 = vrcp.f32 %v537_v24 }
0x11d8   :  { %v847_v26 = vpop.eup %846 }
0x11d9   :  { %v540_v27 = vsel %vm967_vm3, %v845_v25, %v847_v26 }
0x11da   :  { %543 = vrot.lane.b32.xlu0 %v540_v27, %s909_s17  ;;  %v541_v30 = vmul.f32 %v540_v27, %v476_v9 }
0x124c   :  { %v544_v28 = vpop.permute.xlu0 %543 }
0x124d   :  { %v546_v29 = vmul.f32 %v544_v28, %v540_v27 }
0x124f   :  { %548 = vrot.lane.b32.xlu1 %v546_v29, %s910_s18 }
0x12c1   :  { %v549_v31 = vpop.permute.xlu1 %548 }
0x12c2   :  { %v551_v32 = vadd.f32 %v549_v31, %v541_v30 }
0x12c4   :  { %848 = vtanh.f32 %v551_v32 }
0x12ce   :  { %v849_v33 = vpop.eup %848 }
0x12cf   :  { %554 = vrot.lane.b32.xlu0 %v849_v33, %s909_s17 }
0x1341   :  { %v555_v34 = vpop.permute.xlu0 %554 }
0x1342   :  { %v557_v35 = vmul.f32 %v555_v34, %v540_v27 }
0x1344   :  { %v560_v36 = vpack.c.bf16 %v557_v35, %v557_v35 }
0x1346   :  { %562 = vrot.lane.b32.xlu1 %v560_v36, %s910_s18 }
0x13b8   :  { %v563_v37 = vpop.permute.xlu1 %562 }
0x13b9   :  { %781 = vmatmul.mubr.msk.bf16.vlgmr.msra.gmra.mrb[12].mxu1 %vm38_vm4, %v563_v37 }
0x148c   :  { %v601_v39 = vpop.f32.mrb[12].mxu1 }
0x148d   :  { %v607_v40 = vadd.f32 %v693_v38, %v601_v39  ;;  %v782_v41 = vpop.f32.mrb[13].mxu1 }
0x148e   :  { %v604_v42 = vpop.f32.mrb[14].mxu1 }
0x148f   :  { %v695_v43 = vmul.f32 -1.442695, %v607_v40  ;;  %v783_v44 = vpop.f32.mrb[15].mxu1 }
0x1491   :  { %850 = vpow2.f32 %v695_v43 }
0x1492   :  { %852 = vtanh.f32 %v607_v40 }
0x149b   :  { %v851_v45 = vpop.eup %850 }
0x149c   :  { %v612_v46 = vadd.f32 1.0, %v851_v45  ;;  %v853_v47 = vpop.eup %852 }
0x149e   :  { %854 = vrcp.f32 %v612_v46 }
0x14a8   :  { %v855_v48 = vpop.eup %854 }
0x14a9   :  { %v615_v49 = vsel %vm967_vm3, %v853_v47, %v855_v48 }
0x14aa   :  { %618 = vrot.lane.b32.xlu0 %v615_v49, %s909_s17  ;;  %v616_v52 = vmul.f32 %v615_v49, %v551_v32 }
0x151c   :  { %v619_v50 = vpop.permute.xlu0 %618 }
0x151d   :  { %v621_v51 = vmul.f32 %v619_v50, %v615_v49 }
0x151f   :  { %623 = vrot.lane.b32.xlu1 %v621_v51, %s910_s18 }
0x1591   :  { %v624_v53 = vpop.permute.xlu1 %623 }
0x1592   :  { %v626_v54 = vadd.f32 %v624_v53, %v616_v52 }
0x1594   :  { %856 = vtanh.f32 %v626_v54 }
0x159e   :  { %v857_v55 = vpop.eup %856 }
0x159f   :  { %629 = vrot.lane.b32.xlu0 %v857_v55, %s909_s17 }
0x15a3   :  { %640 = vrot.lane.b32.xlu0 %v626_v54, %s911_s0 }
0x1611   :  { %v630_v56 = vpop.permute.xlu0 %629 }
0x1612   :  { %v632_v15 = vmul.f32 %v630_v56, %v615_v49 }
0x1614   :  { %634 = vrot.lane.b32.xlu1 %v632_v15, %s910_s18 }
0x1615   :  { %v641_v57 = vpop.permute.xlu0 %640 }
0x1616   :  { %643 = vst.msk [vmem:[#allocation4] sm:$0x3] %vm637_vm5, %v641_v57 }
0x1617   :  { %869 = shalt.err (!%p866_p4)
}
0x1618   :  { %s870_s11 = scalar_lea.hbm %s1104_s3, 32 }
0x1619   :  { %p871_p5 = scmp.ne.s32.totalorder %s1104_s3, %s870_s11  ;;  %p874_p6 = scmp.lt.u32.totalorder %s870_s11, %s1104_s3 }
0x161b   :  { %p876_p7 = pnand %p874_p6, %p871_p5 }
0x161d   :  { %879 = shalt.err (!%p876_p7)
}
0x161e   :  { %663 = dma.vmem_to_hbm [thread:$0]  %s661_s7, 32, %s1104_s3, [#allocation5]  }
0x161f   :  { %s913_s17 = smov [#allocation2]  }
0x1620   :  { %s650_s18 = sshll.u32 %s913_s17, 4  ;;  %s651_s18 = int_to_ptr.vmem [resolvable:$true] %s650_s18 }
0x1621   :  { %s880_s19 = scalar_lea.vmem %s651_s18, 32  ;;  %p885_p9 = scmp.lt.s32.totalorder %s651_s18, %s651_s18 }
0x1622   :  { %p881_p8 = scmp.ne.s32.totalorder %s651_s18, %s880_s19  ;;  %p886_p10 = scmp.lt.s32.totalorder %s880_s19, %s880_s19 }
0x1624   :  { %p887_p11 = por %p886_p10, %p885_p9 }
0x1626   :  { %p888_p12 = pnand %p887_p11, %p881_p8 }
0x1686   :  { %v635_v58 = vpop.permute.xlu1 %634 }
0x1687   :  { %638 = vst.msk [vmem:[#allocation2] sm:$0x3] %vm637_vm5, %v635_v58 }
0x1688   :  { %891 = shalt.err (!%p888_p12)
}
0x1689   :  { %s892_s22 = scalar_lea.hbm %s1103_s2, 32 }
0x168a   :  { %p893_p13 = scmp.ne.s32.totalorder %s1103_s2, %s892_s22  ;;  %p896_p0 = scmp.lt.u32.totalorder %s892_s22, %s1103_s2 }
0x168c   :  { %p898_p1 = pnand %p896_p0, %p893_p13 }
0x168e   :  { %901 = shalt.err (!%p898_p1)
}
0x168f   :  { %653 = dma.vmem_to_hbm [thread:$0]  %s651_s18, 32, %s1103_s2, [#allocation3]  }
0x1690   :  { %902 = dma.done.wait [#allocation3], 32  }
0x1691   :  { %903 = vsyncadd [#allocation3], 4294967264 }
0x1692   :  { %904 = dma.done.wait [#allocation5], 32  }
0x1693   :  { %905 = vsyncadd [#allocation5], 4294967264 }
0x1694   :  { %670 = vsyncpa [#allocation3], 1 }
0x1695   :  { %671 = vsyncpa [#allocation5], 1 }

</bundles_post_ra>
